<compile_context>
chip_gen: v7x
topology: tpu7x:2x2x1
jax: 0.10.0
libtpu: 0.0.40
codegen_flags: <defaults>
</compile_context>

<pallas_src>
import functools

import jax
import jax.numpy as jnp
from jax import lax
from jax.experimental import pallas as pl
from jax.experimental.pallas import tpu as pltpu


def _round_up(x, m):
    return (x + m - 1) // m * m


# -------------------- Pallas kernel: fused conv-GEMM + bias + LayerNorm --------------------

def _conv_ln_kernel(p_ref, w_ref, b_ref, g_ref, beta_ref, o_ref, *, eps):
    # p_ref: (TM, K) im2col patches; w_ref: (K, D); b/g/beta: (1, D); o_ref: (TM, D)
    # Keep matmul operands in the input dtype; accumulate in f32 on the MXU.
    acc = jnp.dot(p_ref[...], w_ref[...], preferred_element_type=jnp.float32)
    acc = acc + b_ref[...].astype(jnp.float32)

    # LayerNorm over the channel (lane) axis, all in f32.
    mean = jnp.mean(acc, axis=-1, keepdims=True)
    xc = acc - mean
    var = jnp.mean(xc * xc, axis=-1, keepdims=True)
    inv = lax.rsqrt(var + eps)                          # EUP rsqrt (separate VLIW slot)
    y = xc * inv * g_ref[...].astype(jnp.float32) + beta_ref[...].astype(jnp.float32)
    o_ref[...] = y.astype(o_ref.dtype)


def conv_gemm_layernorm(patches, w2d, bias, gamma, beta, *, eps, out_dtype=None):
    """patches: (M, K); w2d: (K, D); bias/gamma/beta: (D,). Returns (M, D)."""
    M, K = patches.shape
    Kw, D = w2d.shape
    assert K == Kw
    out_dtype = out_dtype or patches.dtype

    # Token-tile choice: big enough to amortize the ~0.35us per-grid-step overhead,
    # sublane-aligned (multiple of 8), and at least 2 grid steps so both v7x TCs get work.
    if M <= 8:
        n_steps = 1
    else:
        n_steps = max(2, -(-M // 512))          # ceil(M / 512), but never fewer than 2
    tm = _round_up(-(-M // n_steps), 8)
    Mp = _round_up(M, tm)
    if Mp != M:
        patches = jnp.pad(patches, ((0, Mp - M), (0, 0)))

    out = pl.pallas_call(
        functools.partial(_conv_ln_kernel, eps=eps),
        out_shape=jax.ShapeDtypeStruct((Mp, D), out_dtype),
        grid_spec=pltpu.PrefetchScalarGridSpec(
            num_scalar_prefetch=0,
            grid=(Mp // tm,),
            in_specs=[
                pl.BlockSpec((tm, K), lambda m: (m, 0)),   # patch tile
                pl.BlockSpec((K, D), lambda m: (0, 0)),    # weight (resident across grid)
                pl.BlockSpec((1, D), lambda m: (0, 0)),    # conv bias
                pl.BlockSpec((1, D), lambda m: (0, 0)),    # LN gamma
                pl.BlockSpec((1, D), lambda m: (0, 0)),    # LN beta
            ],
            out_specs=pl.BlockSpec((tm, D), lambda m: (m, 0)),
        ),
        compiler_params=pltpu.CompilerParams(
            dimension_semantics=("parallel",),
            vmem_limit_bytes=48 * 1024 * 1024,   # fits v7x's 64 MiB, raises v5e's 16 MiB default
        ),
    )(patches, w2d, bias.reshape(1, D), gamma.reshape(1, D), beta.reshape(1, D))
    return out[:M]


# ------------------------------------ module wrapper ------------------------------------

class MergeBlockPallas:
    """JAX/Pallas port of CSWin Merge_Block: Conv2d(dim, dim_out, 3, 2, 1) + LayerNorm."""

    def __init__(self, dim, dim_out, key, eps=1e-5):
        self.dim = dim
        self.dim_out = dim_out
        self.eps = eps
        k1, k2 = jax.random.split(key)
        fan_in = dim * 3 * 3
        bound = 1.0 / (fan_in ** 0.5)
        # conv weight in PyTorch OIHW layout (dim_out, dim, 3, 3) + bias (dim_out,)
        self.w = jax.random.uniform(k1, (dim_out, dim, 3, 3), jnp.float32, -bound, bound)
        self.b = jax.random.uniform(k2, (dim_out,), jnp.float32, -bound, bound)
        # LayerNorm affine params (PyTorch defaults: ones / zeros)
        self.gamma = jnp.ones((dim_out,), jnp.float32)
        self.beta = jnp.zeros((dim_out,), jnp.float32)

    def __call__(self, x, H, W, use_pallas=True):
        """x: (B, H*W, dim) -> ((B, Ho*Wo, dim_out), Ho, Wo)"""
        B, N, C = x.shape
        assert N == H * W and C == self.dim
        if not use_pallas:
            return self._reference(x, H, W)

        Ho = (H - 1) // 2 + 1
        Wo = (W - 1) // 2 + 1
        # channels-last image; pad 1 on top/left and just enough on bottom/right for the
        # stride-2 windows (exactly reproduces PyTorch padding=1, stride=2 semantics).
        img = x.reshape(B, H, W, C)
        img = jnp.pad(img, ((0, 0), (1, 2 * Ho - H), (1, 2 * Wo - W), (0, 0)))
        # TODO(synk): the 3x3/stride-2 im2col below stays in plain-JAX glue (one extra HBM
        # pass); folding it into the kernel would need overlapping-window manual DMAs.
        slabs = [img[:, kh:kh + 2 * Ho:2, kw:kw + 2 * Wo:2, :]
                 for kh in range(3) for kw in range(3)]
        patches = jnp.concatenate(slabs, axis=-1).reshape(B * Ho * Wo, 9 * C)

        # weight OIHW -> ((kh, kw, c), dim_out), matching the patch channel ordering
        w2d = jnp.transpose(self.w, (2, 3, 1, 0)).reshape(9 * C, self.dim_out)
        w2d = w2d.astype(x.dtype)

        out = conv_gemm_layernorm(patches, w2d, self.b, self.gamma, self.beta,
                                  eps=self.eps, out_dtype=x.dtype)
        return out.reshape(B, Ho * Wo, self.dim_out), Ho, Wo

    # pure-JAX reference path (mirrors the PyTorch forward exactly)
    def _reference(self, x, H, W):
        B, N, C = x.shape
        img = jnp.transpose(x, (0, 2, 1)).reshape(B, C, H, W)
        y = lax.conv_general_dilated(
            img, self.w, window_strides=(2, 2), padding=((1, 1), (1, 1)),
            dimension_numbers=("NCHW", "OIHW", "NCHW"))
        y = y + self.b[None, :, None, None]
        _, D, Ho, Wo = y.shape
        y = jnp.transpose(y.reshape(B, D, Ho * Wo), (0, 2, 1))
        mean = jnp.mean(y, axis=-1, keepdims=True)
        var = jnp.mean((y - mean) ** 2, axis=-1, keepdims=True)
        y = (y - mean) * lax.rsqrt(var + self.eps) * self.gamma + self.beta
        return y, Ho, Wo


# ------------------------------------------ demo ------------------------------------------

if __name__ == "__main__":
    key = jax.random.PRNGKey(0)
    k_in, k_mod = jax.random.split(key)

    # small shapes consistent with the module: B=2, dim=32 -> dim_out=64, H=W=16
    B, H, W, dim, dim_out = 2, 16, 16, 32, 64
    x = jax.random.normal(k_in, (B, H * W, dim), dtype=jnp.float32)

    mod = MergeBlockPallas(dim, dim_out, key=k_mod)

    out, Ho, Wo = mod(x, H, W, use_pallas=True)
    out = jax.block_until_ready(out)

    ref, Ho_r, Wo_r = mod(x, H, W, use_pallas=False)
    ref = jax.block_until_ready(ref)

    assert (Ho, Wo) == (Ho_r, Wo_r) == (H // 2, W // 2)
    assert out.shape == (B, Ho * Wo, dim_out)
    assert jnp.allclose(out, ref, atol=1e-4, rtol=1e-4)

    print("KERNEL_OK")
</pallas_src>

<mosaic_0001>
module attributes {stable_mosaic.version = 11 : i64} {
  func.func @_conv_ln_kernel(%arg0: i32, %arg1: memref<64x288xf32, #tpu.memory_space<vmem>>, %arg2: memref<288x64xf32, #tpu.memory_space<vmem>>, %arg3: memref<1x64xf32, #tpu.memory_space<vmem>>, %arg4: memref<1x64xf32, #tpu.memory_space<vmem>>, %arg5: memref<1x64xf32, #tpu.memory_space<vmem>>, %arg6: memref<64x64xf32, #tpu.memory_space<vmem>>) attributes {dimension_semantics = [#tpu.dimension_semantics<parallel>], iteration_bounds = array<i64: 2>, scalar_prefetch = 0 : i64, scratch_operands = 0 : i64, tpu.core_type = #tpu.core_type<tc>, window_params = [{transform_indices = @transform_0, window_bounds = array<i64: 64, 288>}, {pipeline_mode = #tpu.pipeline_mode<synchronous>, transform_indices = @transform_1, window_bounds = array<i64: 288, 64>}, {pipeline_mode = #tpu.pipeline_mode<synchronous>, transform_indices = @transform_2, window_bounds = array<i64: 1, 64>}, {pipeline_mode = #tpu.pipeline_mode<synchronous>, transform_indices = @transform_3, window_bounds = array<i64: 1, 64>}, {pipeline_mode = #tpu.pipeline_mode<synchronous>, transform_indices = @transform_4, window_bounds = array<i64: 1, 64>}, {transform_indices = @transform_5, window_bounds = array<i64: 64, 64>}]} {
    %c0 = arith.constant 0 : index
    %c0_0 = arith.constant 0 : index
    %0 = vector.load %arg1[%c0, %c0_0] : memref<64x288xf32, #tpu.memory_space<vmem>>, vector<64x288xf32>
    %c0_1 = arith.constant 0 : index
    %c0_2 = arith.constant 0 : index
    %1 = vector.load %arg2[%c0_1, %c0_2] : memref<288x64xf32, #tpu.memory_space<vmem>>, vector<288x64xf32>
    %cst = arith.constant dense<0.000000e+00> : vector<64x64xf32>
    %2 = tpu.matmul %0, %1, %cst {dimension_numbers = #tpu.dot_dimension_numbers<[1], [0], [0], [1], [0, 0, 1, 1], [], []>} : vector<64x288xf32>, vector<288x64xf32>, vector<64x64xf32> -> vector<64x64xf32>
    %c0_3 = arith.constant 0 : index
    %c0_4 = arith.constant 0 : index
    %3 = vector.load %arg3[%c0_3, %c0_4] : memref<1x64xf32, #tpu.memory_space<vmem>>, vector<1x64xf32>
    %4 = vector.broadcast %3 : vector<1x64xf32> to vector<64x64xf32>
    %5 = arith.addf %2, %4 : vector<64x64xf32>
    %cst_5 = arith.constant dense<0.000000e+00> : vector<64xf32>
    %6 = vector.multi_reduction <add>, %5, %cst_5 [1] : vector<64x64xf32> to vector<64xf32>
    %7 = vector.shape_cast %6 : vector<64xf32> to vector<64x1xf32>
    %cst_6 = arith.constant 6.400000e+01 : f32
    %8 = vector.broadcast %cst_6 : f32 to vector<64x1xf32>
    %9 = arith.divf %7, %8 : vector<64x1xf32>
    %10 = vector.broadcast %9 : vector<64x1xf32> to vector<64x64xf32>
    %11 = arith.subf %5, %10 : vector<64x64xf32>
    %12 = arith.mulf %11, %11 : vector<64x64xf32>
    %cst_7 = arith.constant dense<0.000000e+00> : vector<64xf32>
    %13 = vector.multi_reduction <add>, %12, %cst_7 [1] : vector<64x64xf32> to vector<64xf32>
    %14 = vector.shape_cast %13 : vector<64xf32> to vector<64x1xf32>
    %cst_8 = arith.constant 6.400000e+01 : f32
    %15 = vector.broadcast %cst_8 : f32 to vector<64x1xf32>
    %16 = arith.divf %14, %15 : vector<64x1xf32>
    %cst_9 = arith.constant 9.99999974E-6 : f32
    %17 = vector.broadcast %cst_9 : f32 to vector<64x1xf32>
    %18 = arith.addf %16, %17 : vector<64x1xf32>
    %19 = math.rsqrt %18 : vector<64x1xf32>
    %20 = vector.broadcast %19 : vector<64x1xf32> to vector<64x64xf32>
    %21 = arith.mulf %11, %20 : vector<64x64xf32>
    %c0_10 = arith.constant 0 : index
    %c0_11 = arith.constant 0 : index
    %22 = vector.load %arg4[%c0_10, %c0_11] : memref<1x64xf32, #tpu.memory_space<vmem>>, vector<1x64xf32>
    %23 = vector.broadcast %22 : vector<1x64xf32> to vector<64x64xf32>
    %24 = arith.mulf %21, %23 : vector<64x64xf32>
    %c0_12 = arith.constant 0 : index
    %c0_13 = arith.constant 0 : index
    %25 = vector.load %arg5[%c0_12, %c0_13] : memref<1x64xf32, #tpu.memory_space<vmem>>, vector<1x64xf32>
    %26 = vector.broadcast %25 : vector<1x64xf32> to vector<64x64xf32>
    %27 = arith.addf %24, %26 : vector<64x64xf32>
    %c0_14 = arith.constant 0 : index
    %c0_15 = arith.constant 0 : index
    %28 = vector.load %arg6[%c0_14, %c0_15] : memref<64x64xf32, #tpu.memory_space<vmem>>, vector<64x64xf32>
    tpu.vector_store %arg6[%c0_14, %c0_15], %27 {strides = array<i32>} : memref<64x64xf32, #tpu.memory_space<vmem>>, vector<64x64xf32>,
    return
  }
  func.func @transform_0(%arg0: i32) -> (i32, i32) {
    %c0_i32 = arith.constant 0 : i32
    %c0_i32_0 = arith.constant 0 : i32
    return %arg0, %c0_i32 : i32, i32
  }
  func.func @transform_1(%arg0: i32) -> (i32, i32) {
    %c0_i32 = arith.constant 0 : i32
    %c0_i32_0 = arith.constant 0 : i32
    %c0_i32_1 = arith.constant 0 : i32
    return %c0_i32, %c0_i32_0 : i32, i32
  }
  func.func @transform_2(%arg0: i32) -> (i32, i32) {
    %c0_i32 = arith.constant 0 : i32
    %c0_i32_0 = arith.constant 0 : i32
    %c0_i32_1 = arith.constant 0 : i32
    return %c0_i32, %c0_i32_0 : i32, i32
  }
  func.func @transform_3(%arg0: i32) -> (i32, i32) {
    %c0_i32 = arith.constant 0 : i32
    %c0_i32_0 = arith.constant 0 : i32
    %c0_i32_1 = arith.constant 0 : i32
    return %c0_i32, %c0_i32_0 : i32, i32
  }
  func.func @transform_4(%arg0: i32) -> (i32, i32) {
    %c0_i32 = arith.constant 0 : i32
    %c0_i32_0 = arith.constant 0 : i32
    %c0_i32_1 = arith.constant 0 : i32
    return %c0_i32, %c0_i32_0 : i32, i32
  }
  func.func @transform_5(%arg0: i32) -> (i32, i32) {
    %c0_i32 = arith.constant 0 : i32
    %c0_i32_0 = arith.constant 0 : i32
    return %arg0, %c0_i32 : i32, i32
  }
}

</mosaic_0001>

<bundles_post_ra>
// kernel: tpu_custom_call.1
= control target key start
LH: loop header
LB: loop body
LE: loop exit
PB: predicated region body
PF: predicated region fallthrough
CT: control target
= control target key end

     0   :  { %s962_s18 = smov 0   ;;  %s1208_s0 = inlined_call_operand.vmem [shape: f32[128,288], index: 0, kind: input, shape index: {}]   ;;  %s1209_s1 = inlined_call_operand.vmem [shape: f32[288,64], index: 1, kind: input, shape index: {}]   ;;  %s1210_s2 = inlined_call_operand.vmem [shape: f32[1,64], index: 2, kind: input, shape index: {}]   ;;  %s1211_s3 = inlined_call_operand.vmem [shape: f32[1,64], index: 3, kind: input, shape index: {}]   ;;  %s1212_s4 = inlined_call_operand.vmem [shape: f32[1,64], index: 4, kind: input, shape index: {}]   ;;  %s1213_s5 = inlined_call_operand.vmem [shape: f32[128,64], index: 5, kind: output, shape index: {}]  }
   0x1 LB: > { %s733_s19 = sadd.s32 4294967295, %s930_s18   ;;  %p737_p0 = scmp.ge.s32.totalorder %s930_s18, 1  ;;  %s930_s18 = sphi %s962_s18, %s15_s18  }
   0x2   : > { %p189_p1 = scmp.lt.s32.totalorder %s930_s18, 3 }
   0x4   : > { %p190_p2 = pnand %p737_p0, %p189_p1 }
   0x5   : > { %v271_v0 = vld [vmem:[%s1209_s1 + $0x80] sm:$0xff] (!%p190_p2)  ;;  %v272_v1 = vld [vmem:[%s1209_s1 + $0x88] sm:$0xff] (!%p190_p2)  ;;  %s738_s26 = sshll.u32 (!%p190_p2), %s733_s19, 3  ;;  %v273_v5 = vld [vmem:[%s1209_s1 + $0x90] sm:$0xff] (!%p190_p2)  ;;  %vm298_vm0 = vcmask (!%p190_p2), 261120   ;;  %vm533_vm1 = vcmask (!%p190_p2), 523264  }
   0x6   : > { %193 = sbr.rel (%p190_p2) target bundleno = 597 (0x255), region = 40  ;;  %v255_v2 = vld [vmem:[%s1209_s1] sm:$0xff] (!%p190_p2)  ;;  %v843_v3 = vpack.c.bf16 (!%p190_p2), %v272_v1, %v271_v0  ;;  %v256_v4 = vld [vmem:[%s1209_s1 + $0x8] sm:$0xff] (!%p190_p2)  ;;  %v274_v6 = vld [vmem:[%s1209_s1 + $0x98] sm:$0xff] (!%p190_p2)  ;;  %p219_p3 = scmp.lt.s32.totalorder (!%p190_p2), %s738_s26, 15 }
   0x7   : > { %v845_v7 = vpack.c.bf16 (!%p190_p2), %v256_v4, %v255_v2  ;;  %v847_v8 = vpack.c.bf16 (!%p190_p2), %v274_v6, %v273_v5  ;;  %v257_v9 = vld [vmem:[%s1209_s1 + $0x10] sm:$0xff] (!%p190_p2)  ;;  %v258_v10 = vld [vmem:[%s1209_s1 + $0x18] sm:$0xff] (!%p190_p2)  ;;  %v275_v11 = vld [vmem:[%s1209_s1 + $0xa0] sm:$0xff] (!%p190_p2) }
   0x8   : > { %844 = vmatprep.subr.bf16.mxu0 (!%p190_p2), %v843_v3  ;;  %883 = vmatprep.subr.bf16.mxu1 (!%p190_p2), %v843_v3  ;;  %v276_v12 = vld [vmem:[%s1209_s1 + $0xa8] sm:$0xff] (!%p190_p2)  ;;  %v849_v13 = vpack.c.bf16 (!%p190_p2), %v258_v10, %v257_v9  ;;  %v259_v15 = vld [vmem:[%s1209_s1 + $0x20] sm:$0xff] (!%p190_p2)  ;;  %v277_v17 = vld [vmem:[%s1209_s1 + $0xb0] sm:$0xff] (!%p190_p2) }
   0x9   : > { %846 = vmatpush3.bf16.msra.mxu0 (!%p190_p2), %v845_v7  ;;  %891 = vmatpush3.bf16.msra.mxu1 (!%p190_p2), %v845_v7  ;;  %v851_v14 = vpack.c.bf16 (!%p190_p2), %v276_v12, %v275_v11  ;;  %v260_v16 = vld [vmem:[%s1209_s1 + $0x28] sm:$0xff] (!%p190_p2)  ;;  %v278_v18 = vld [vmem:[%s1209_s1 + $0xb8] sm:$0xff] (!%p190_p2)  ;;  %v261_v21 = vld [vmem:[%s1209_s1 + $0x30] sm:$0xff] (!%p190_p2) }
   0xa   : > { %848 = vmatprep.subr.bf16.mxu0 (!%p190_p2), %v847_v8  ;;  %884 = vmatprep.subr.bf16.mxu1 (!%p190_p2), %v847_v8  ;;  %v853_v19 = vpack.c.bf16 (!%p190_p2), %v260_v16, %v259_v15  ;;  %v855_v20 = vpack.c.bf16 (!%p190_p2), %v278_v18, %v277_v17  ;;  %v262_v22 = vld [vmem:[%s1209_s1 + $0x38] sm:$0xff] (!%p190_p2)  ;;  %v279_v23 = vld [vmem:[%s1209_s1 + $0xc0] sm:$0xff] (!%p190_p2)  ;;  %v280_v24 = vld [vmem:[%s1209_s1 + $0xc8] sm:$0xff] (!%p190_p2) }
   0xb   : > { %v857_v27 = vpack.c.bf16 (!%p190_p2), %v262_v22, %v261_v21  ;;  %v859_v28 = vpack.c.bf16 (!%p190_p2), %v280_v24, %v279_v23  ;;  %v263_v29 = vld [vmem:[%s1209_s1 + $0x40] sm:$0xff] (!%p190_p2)  ;;  %v264_v30 = vld [vmem:[%s1209_s1 + $0x48] sm:$0xff] (!%p190_p2)  ;;  %v281_v31 = vld [vmem:[%s1209_s1 + $0xd0] sm:$0xff] (!%p190_p2) }
   0xc   : > { %v282_v32 = vld [vmem:[%s1209_s1 + $0xd8] sm:$0xff] (!%p190_p2)  ;;  %v861_v33 = vpack.c.bf16 (!%p190_p2), %v264_v30, %v263_v29  ;;  %v265_v35 = vld [vmem:[%s1209_s1 + $0x50] sm:$0xff] (!%p190_p2)  ;;  %v283_v37 = vld [vmem:[%s1209_s1 + $0xe0] sm:$0xff] (!%p190_p2) }
   0xd   : > { %s1215_s26 = smov (!%p219_p3, %s738_s26), 15  ;;  %850 = vmatpush3.bf16.msra.mxu0 %v849_v13  ;;  %892 = vmatpush3.bf16.msra.mxu1 %v849_v13  ;;  %v863_v34 = vpack.c.bf16 %v282_v32, %v281_v31  ;;  %v266_v36 = vld [vmem:[%s1209_s1 + $0x58] sm:$0xff]  ;;  %v284_v38 = vld [vmem:[%s1209_s1 + $0xe8] sm:$0xff]  ;;  %v267_v41 = vld [vmem:[%s1209_s1 + $0x60] sm:$0xff] }
   0xe   : > { %s899_s21 = smul.u32 24, %s1215_s26  ;;  %852 = vmatprep.subr.bf16.mxu0 %v851_v14  ;;  %885 = vmatprep.subr.bf16.mxu1 %v851_v14  ;;  %v865_v39 = vpack.c.bf16 %v266_v36, %v265_v35  ;;  %v867_v40 = vpack.c.bf16 %v284_v38, %v283_v37  ;;  %v268_v42 = vld [vmem:[%s1209_s1 + $0x68] sm:$0xff]  ;;  %v285_v43 = vld [vmem:[%s1209_s1 + $0xf0] sm:$0xff]  ;;  %v286_v44 = vld [vmem:[%s1209_s1 + $0xf8] sm:$0xff]  ;;  %s741_s8 = sshll.u32 %s1215_s26, 3 }
   0xf   : > { %v869_v45 = vpack.c.bf16 %v268_v42, %v267_v41  ;;  %v871_v46 = vpack.c.bf16 %v286_v44, %v285_v43  ;;  %v269_v47 = vld [vmem:[%s1209_s1 + $0x70] sm:$0xff]  ;;  %v270_v48 = vld [vmem:[%s1209_s1 + $0x78] sm:$0xff]  ;;  %v287_v49 = vld [vmem:[%s1209_s1 + $0x100] sm:$0xff]  ;;  %s1180_s13 = scalar_lea.vmem %s1213_s5, %s741_s8 }
  0x10   : > { %s1018_s29 = scalar_lea.vmem %s1208_s0, %s899_s21  ;;  %v288_v50 = vld [vmem:[%s1209_s1 + $0x108] sm:$0xff]  ;;  %v873_v51 = vpack.c.bf16 %v270_v48, %v269_v47  ;;  %v289_v53 = vld [vmem:[%s1209_s1 + $0x110] sm:$0xff]  ;;  %v290_v54 = vld [vmem:[%s1209_s1 + $0x118] sm:$0xff] }
  0x11   : > { %v232_v25 = vld [vmem:[%s1018_s29 + $0x8] sm:$0xff]  ;;  %v250_v26 = vld [vmem:[%s1018_s29 + $0x98] sm:$0xff]  ;;  %854 = vmatpush3.bf16.msra.mxu0 %v853_v19  ;;  %893 = vmatpush3.bf16.msra.mxu1 %v853_v19  ;;  %v875_v52 = vpack.c.bf16 %v288_v50, %v287_v49  ;;  %v231_v55 = vld [vmem:[%s1018_s29] sm:$0xff]  ;;  %v879_v58 = vpack.c.bf16 %v290_v54, %v289_v53 }
  0x12   : > { %387 = vmatprep.mubr.f32.mxu0 %v232_v25  ;;  %856 = vmatprep.subr.bf16.mxu0 %v855_v20  ;;  %v249_v56 = vld [vmem:[%s1018_s29 + $0x90] sm:$0xff]  ;;  %v235_v57 = vld [vmem:[%s1018_s29 + $0x20] sm:$0xff]  ;;  %v234_v60 = vld [vmem:[%s1018_s29 + $0x18] sm:$0xff] }
  0x13   : > { %886 = vmatprep.subr.bf16.mxu1 %v855_v20  ;;  %417 = vmatprep.mubr.f32.mxu1 %v250_v26  ;;  %v253_v59 = vld [vmem:[%s1018_s29 + $0xb0] sm:$0xff]  ;;  %v252_v61 = vld [vmem:[%s1018_s29 + $0xa8] sm:$0xff]  ;;  %v238_v62 = vld [vmem:[%s1018_s29 + $0x38] sm:$0xff] }
  0x14   : > { %v233_v63 = vld [vmem:[%s1018_s29 + $0x10] sm:$0xff]  ;;  %v236_v1 = vld [vmem:[%s1018_s29 + $0x28] sm:$0xff]  ;;  %v239_v3 = vld [vmem:[%s1018_s29 + $0x40] sm:$0xff] }
  0x15   : > { %858 = vmatpush3.bf16.msra.mxu0 %v857_v27  ;;  %894 = vmatpush3.bf16.msra.mxu1 %v857_v27  ;;  %v237_v0 = vld [vmem:[%s1018_s29 + $0x30] sm:$0xff]  ;;  %v240_v4 = vld [vmem:[%s1018_s29 + $0x48] sm:$0xff]  ;;  %v242_v5 = vld [vmem:[%s1018_s29 + $0x58] sm:$0xff] }
  0x16   : > { %860 = vmatprep.subr.bf16.mxu0 %v859_v28  ;;  %887 = vmatprep.subr.bf16.mxu1 %v859_v28  ;;  %v241_v2 = vld [vmem:[%s1018_s29 + $0x50] sm:$0xff]  ;;  %v244_v6 = vld [vmem:[%s1018_s29 + $0x68] sm:$0xff]  ;;  %v243_v8 = vld [vmem:[%s1018_s29 + $0x60] sm:$0xff] }
  0x17   : > { %v245_v7 = vld [vmem:[%s1018_s29 + $0x70] sm:$0xff]  ;;  %v248_v9 = vld [vmem:[%s1018_s29 + $0x88] sm:$0xff]  ;;  %v247_v10 = vld [vmem:[%s1018_s29 + $0x80] sm:$0xff] }
  0x18   : > { %v251_v11 = vld [vmem:[%s1018_s29 + $0xa0] sm:$0xff]  ;;  %v246_v12 = vld [vmem:[%s1018_s29 + $0x78] sm:$0xff] }
  0x19   : > { %862 = vmatpush3.bf16.msra.mxu0 %v861_v33  ;;  %895 = vmatpush3.bf16.msra.mxu1 %v861_v33  ;;  %v254_v13 = vld [vmem:[%s1018_s29 + $0xb8] sm:$0xff]  ;;  %v742_v24 = vld [vmem:[%s1210_s2] ss:$0 sm:$0xff] }
  0x1a   : > { %864 = vmatprep.subr.bf16.mxu0 %v863_v34  ;;  %888 = vmatprep.subr.bf16.mxu1 %v863_v34 }
  0x1d   : > { %866 = vmatpush3.bf16.msra.mxu0 %v865_v39  ;;  %896 = vmatpush3.bf16.msra.mxu1 %v865_v39 }
  0x1e   : > { %868 = vmatprep.subr.bf16.mxu0 %v867_v40  ;;  %889 = vmatprep.subr.bf16.mxu1 %v867_v40 }
  0x21   : > { %870 = vmatpush3.bf16.msra.mxu0 %v869_v45  ;;  %897 = vmatpush3.bf16.msra.mxu1 %v869_v45 }
  0x22   : > { %872 = vmatprep.subr.bf16.mxu0 %v871_v46  ;;  %890 = vmatprep.subr.bf16.mxu1 %v871_v46 }
  0x25   : > { %874 = vmatpush3.bf16.msra.mxu0 %v873_v51  ;;  %898 = vmatpush3.bf16.msra.mxu1 %v873_v51 }
  0x26   : > { %876 = vmatprep.subr.bf16.mxu1 %v875_v52 }
  0x28   : > { %388 = vmatmul.mubr.f32.vlgmr.msra.gmra.mrb[0].mxu0 %v231_v55  ;;  %418 = vmatmul.mubr.f32.vlgmr.msra.gmra.mrb[0].mxu1 %v249_v56 }
  0x29   : > { %878 = vmatpush3.bf16.msra.mxu1 %v875_v52  ;;  %392 = vmatprep.mubr.f32.mxu0 %v235_v57 }
  0x2a   : > { %422 = vmatprep.mubr.f32.mxu1 %v253_v59  ;;  %880 = vmatprep.subr.bf16.mxu1 %v879_v58 }
  0x2c   : > { %393 = vmatmul.mubr.f32.gmra.mrb[2].mxu0 %v234_v60  ;;  %423 = vmatmul.mubr.f32.gmra.mrb[2].mxu1 %v252_v61 }
  0x2d   : > { %882 = vmatpush3.bf16.msra.mxu1 %v879_v58  ;;  %397 = vmatprep.mubr.f32.mxu0 %v238_v62 }
  0x2e   : > { %831 = vmatprep.mubr.msk.f32.mxu1 %vm298_vm0, %v233_v63 }
  0x30   : > { %398 = vmatmul.mubr.f32.gmra.mrb[4].mxu0 %v237_v0  ;;  %832 = vmatmul.mubr.msk.f32.vlgmr.msra.gmra.mrb[4].mxu1 %vm298_vm0, %v236_v1 }
  0x31   : > { %402 = vmatprep.mubr.f32.mxu0 %v241_v2  ;;  %834 = vmatprep.mubr.msk.f32.mxu1 %vm298_vm0, %v239_v3 }
  0x34   : > { %403 = vmatmul.mubr.f32.gmra.mrb[6].mxu0 %v240_v4  ;;  %835 = vmatmul.mubr.msk.f32.gmra.mrb[6].mxu1 %vm298_vm0, %v242_v5 }
  0x35   : > { %407 = vmatprep.mubr.f32.mxu0 %v244_v6  ;;  %837 = vmatprep.mubr.msk.f32.mxu1 %vm298_vm0, %v245_v7 }
  0x38   : > { %408 = vmatmul.mubr.f32.gmra.mrb[8].mxu0 %v243_v8  ;;  %838 = vmatmul.mubr.msk.f32.gmra.mrb[8].mxu1 %vm298_vm0, %v248_v9 }
  0x39   : > { %412 = vmatprep.mubr.f32.mxu0 %v247_v10  ;;  %840 = vmatprep.mubr.msk.f32.mxu1 %vm298_vm0, %v251_v11 }
  0x3c   : > { %413 = vmatmul.mubr.f32.gmra.mrb[10].mxu0 %v246_v12  ;;  %841 = vmatmul.mubr.msk.f32.gmra.mrb[10].mxu1 %vm298_vm0, %v254_v13 }
  0xfb   : > { %v787_v14 = vpop.f32.mrb[0].mxu0  ;;  %v805_v15 = vpop.f32.mrb[0].mxu1 }
  0xfc   : > { %v788_v16 = vpop.f32.mrb[1].mxu0  ;;  %v806_v17 = vpop.f32.mrb[1].mxu1 }
  0xfd   : > { %v789_v18 = vadd.f32 %v788_v16, %v787_v14  ;;  %v807_v19 = vadd.f32 %v806_v17, %v805_v15 }
  0xff   : > { %v790_v20 = vpop.f32.mrb[2].mxu0  ;;  %v808_v21 = vpop.f32.mrb[2].mxu1  ;;  %v390_v30 = vadd.f32 %v789_v18, %v742_v24  ;;  %v420_v57 = vadd.f32 %v807_v19, %v742_v24 }
 0x100   : > { %v791_v22 = vpop.f32.mrb[3].mxu0  ;;  %v809_v23 = vpop.f32.mrb[3].mxu1 }
 0x101   : > { %v792_v25 = vadd.f32 %v791_v22, %v790_v20  ;;  %v810_v26 = vadd.f32 %v809_v23, %v808_v21 }
 0x103   : > { %v793_v27 = vpop.f32.mrb[4].mxu0  ;;  %v395_v28 = vadd.f32 %v792_v25, %v742_v24  ;;  %v833_v29 = vpop.f32.mrb[4].mxu1  ;;  %v425_v53 = vadd.f32 %v810_v26, %v742_v24 }
 0x104   : > { %v794_v31 = vpop.f32.mrb[5].mxu0  ;;  %v494_v32 = vpop.f32.mrb[5].mxu1 }
 0x105   : > { %v500_v33 = vadd.f32 %v833_v29, %v395_v28  ;;  %v795_v34 = vadd.f32 %v794_v31, %v793_v27  ;;  %v495_v35 = vadd.f32 %v494_v32, %v390_v30 }
 0x107   : > { %v796_v36 = vpop.f32.mrb[6].mxu0  ;;  %v836_v37 = vpop.f32.mrb[6].mxu1  ;;  %v400_v38 = vadd.f32 %v795_v34, %v742_v24  ;;  %v534_v39 = vsel %vm533_vm1, %v495_v35, 0.0  ;;  %v537_v47 = vsel %vm533_vm1, %v500_v33, 0.0 }
 0x108   : > { %v797_v40 = vpop.f32.mrb[7].mxu0  ;;  %v504_v41 = vpop.f32.mrb[7].mxu1  ;;  %535 = vadd.xlane.f32.xlu0 %v534_v39 }
 0x109   : > { %v798_v42 = vadd.f32 %v797_v40, %v796_v36  ;;  %v505_v43 = vadd.f32 %v504_v41, %v400_v38 }
 0x10b   : > { %v405_v44 = vadd.f32 %v798_v42, %v742_v24  ;;  %v799_v45 = vpop.f32.mrb[8].mxu0  ;;  %v540_v46 = vsel %vm533_vm1, %v505_v43, 0.0  ;;  %v839_v48 = vpop.f32.mrb[8].mxu1 }
 0x10c   : > { %v800_v49 = vpop.f32.mrb[9].mxu0  ;;  %541 = vadd.xlane.f32.xlu1 %v540_v46  ;;  %538 = vadd.xlane.f32.xlu0 %v537_v47  ;;  %v514_v50 = vpop.f32.mrb[9].mxu1 }
 0x10d   : > { %v801_v51 = vadd.f32 %v800_v49, %v799_v45  ;;  %v510_v52 = vadd.f32 %v836_v37, %v405_v44 }
 0x10f   : > { %v410_v54 = vadd.f32 %v801_v51, %v742_v24  ;;  %v802_v55 = vpop.f32.mrb[10].mxu0  ;;  %v842_v56 = vpop.f32.mrb[10].mxu1  ;;  %v543_v58 = vsel %vm533_vm1, %v510_v52, 0.0 }
 0x110   : > { %v530_v59 = vadd.f32 %v842_v56, %v425_v53  ;;  %v803_v60 = vpop.f32.mrb[11].mxu0  ;;  %v524_v61 = vpop.f32.mrb[11].mxu1  ;;  %544 = vadd.xlane.f32.xlu1 %v543_v58 }
 0x111   : > { %v515_v62 = vadd.f32 %v514_v50, %v410_v54  ;;  %v804_v63 = vadd.f32 %v803_v60, %v802_v55  ;;  %v525_v0 = vadd.f32 %v524_v61, %v420_v57 }
 0x112   : > { %v555_v6 = vsel %vm533_vm1, %v530_v59, 0.0 }
 0x113   : > { %v415_v1 = vadd.f32 %v804_v63, %v742_v24  ;;  %v546_v2 = vsel %vm533_vm1, %v515_v62, 0.0  ;;  %v552_v5 = vsel %vm533_vm1, %v525_v0, 0.0 }
 0x114   : > { %547 = vadd.xlane.f32.xlu0 %v546_v2 }
 0x115   : > { %v520_v3 = vadd.f32 %v839_v48, %v415_v1 }
 0x117   : > { %v549_v4 = vsel %vm533_vm1, %v520_v3, 0.0 }
 0x118   : > { %550 = vadd.xlane.f32.xlu1 %v549_v4  ;;  %553 = vadd.xlane.f32.xlu0 %v552_v5 }
 0x11c   : > { %556 = vadd.xlane.f32.xlu1 %v555_v6 }
 0x195   : > { %v536_v7 = vpop.xlane.xlu0 %535 }
 0x196   : > { %v559_v8 = vmul.f32 0.015625, %v536_v7 }
 0x198   : > { %v1129_v9 = vsub.f32 %v495_v35, %v559_v8 }
 0x199   : > { %v542_v10 = vpop.xlane.xlu1 %541  ;;  %v539_v11 = vpop.xlane.xlu0 %538 }
 0x19a   : > { %v561_v12 = vmul.f32 0.015625, %v542_v10  ;;  %v560_v13 = vmul.f32 0.015625, %v539_v11  ;;  %v575_v14 = vmul.f32 %v1129_v9, %v1129_v9 }
 0x19c   : > { %v1133_v15 = vsub.f32 %v505_v43, %v561_v12  ;;  %v1135_v16 = vsub.f32 %v500_v33, %v560_v13  ;;  %v583_v17 = vsel %vm533_vm1, %v575_v14, 0.0 }
 0x19d   : > { %v545_v18 = vpop.xlane.xlu1 %544  ;;  %584 = vadd.xlane.f32.xlu0 %v583_v17 }
 0x19e   : > { %v562_v19 = vmul.f32 0.015625, %v545_v18  ;;  %v577_v20 = vmul.f32 %v1133_v15, %v1133_v15  ;;  %v576_v21 = vmul.f32 %v1135_v16, %v1135_v16 }
 0x1a0   : > { %v1142_v22 = vsub.f32 %v510_v52, %v562_v19  ;;  %v589_v23 = vsel %vm533_vm1, %v577_v20, 0.0  ;;  %v586_v24 = vsel %vm533_vm1, %v576_v21, 0.0 }
 0x1a1   : > { %590 = vadd.xlane.f32.xlu0 %v589_v23  ;;  %587 = vadd.xlane.f32.xlu1 %v586_v24  ;;  %v548_v25 = vpop.xlane.xlu0 %547 }
 0x1a2   : > { %v563_v26 = vmul.f32 0.015625, %v548_v25  ;;  %v578_v27 = vmul.f32 %v1142_v22, %v1142_v22 }
 0x1a4   : > { %v1148_v28 = vsub.f32 %v515_v62, %v563_v26  ;;  %v592_v29 = vsel %vm533_vm1, %v578_v27, 0.0  ;;  %v751_v62 = vld [vmem:[%s1211_s3] ss:$0 sm:$0xff] }
 0x1a5   : > { %v551_v30 = vpop.xlane.xlu1 %550  ;;  %593 = vadd.xlane.f32.xlu1 %v592_v29  ;;  %v554_v31 = vpop.xlane.xlu0 %553 }
 0x1a6   : > { %v564_v32 = vmul.f32 0.015625, %v551_v30  ;;  %v565_v33 = vmul.f32 0.015625, %v554_v31  ;;  %v579_v34 = vmul.f32 %v1148_v28, %v1148_v28 }
 0x1a8   : > { %v1153_v35 = vsub.f32 %v520_v3, %v564_v32  ;;  %v1155_v36 = vsub.f32 %v525_v0, %v565_v33  ;;  %v595_v37 = vsel %vm533_vm1, %v579_v34, 0.0  ;;  %v752_v3 = vld [vmem:[%s1212_s4] ss:$0 sm:$0xff] }
 0x1a9   : > { %v557_v38 = vpop.xlane.xlu1 %556  ;;  %596 = vadd.xlane.f32.xlu0 %v595_v37 }
 0x1aa   : > { %v566_v39 = vmul.f32 0.015625, %v557_v38  ;;  %v580_v40 = vmul.f32 %v1153_v35, %v1153_v35  ;;  %v581_v41 = vmul.f32 %v1155_v36, %v1155_v36 }
 0x1ac   : > { %v1162_v42 = vsub.f32 %v530_v59, %v566_v39  ;;  %v598_v43 = vsel %vm533_vm1, %v580_v40, 0.0  ;;  %v601_v44 = vsel %vm533_vm1, %v581_v41, 0.0 }
 0x1ad   : > { %599 = vadd.xlane.f32.xlu1 %v598_v43  ;;  %602 = vadd.xlane.f32.xlu0 %v601_v44 }
 0x1ae   : > { %v582_v45 = vmul.f32 %v1162_v42, %v1162_v42 }
 0x1b0   : > { %v604_v46 = vsel %vm533_vm1, %v582_v45, 0.0 }
 0x1b1   : > { %605 = vadd.xlane.f32.xlu1 %v604_v46 }
 0x22a   : > { %v585_v47 = vpop.xlane.xlu0 %584 }
 0x22b   : > { %v607_v48 = vmul.f32 0.015625, %v585_v47 }
 0x22d   : > { %v615_v49 = vadd.f32 1e-05, %v607_v48 }
 0x22e   : > { %v588_v50 = vpop.xlane.xlu1 %587  ;;  %v591_v51 = vpop.xlane.xlu0 %590 }
 0x22f   : > { %908 = vrsqrt.f32 %v615_v49  ;;  %v608_v52 = vmul.f32 0.015625, %v588_v50  ;;  %v609_v53 = vmul.f32 0.015625, %v591_v51 }
 0x231   : > { %v616_v54 = vadd.f32 1e-05, %v608_v52  ;;  %v617_v55 = vadd.f32 1e-05, %v609_v53 }
 0x232   : > { %v594_v56 = vpop.xlane.xlu1 %593 }
 0x233   : > { %910 = vrsqrt.f32 %v616_v54  ;;  %v610_v57 = vmul.f32 0.015625, %v594_v56 }
 0x234   : > { %912 = vrsqrt.f32 %v617_v55 }
 0x235   : > { %v618_v58 = vadd.f32 1e-05, %v610_v57 }
 0x236   : > { %v597_v59 = vpop.xlane.xlu0 %596 }
 0x237   : > { %914 = vrsqrt.f32 %v618_v58  ;;  %v611_v60 = vmul.f32 0.015625, %v597_v59 }
 0x239   : > { %v909_v61 = vpop.eup %908  ;;  %v619_v63 = vadd.f32 1e-05, %v611_v60 }
 0x23a   : > { %v631_v0 = vmul.f32 %v909_v61, %v1129_v9  ;;  %v600_v1 = vpop.xlane.xlu1 %599  ;;  %v603_v2 = vpop.xlane.xlu0 %602 }
 0x23b   : > { %916 = vrsqrt.f32 %v619_v63  ;;  %v612_v4 = vmul.f32 0.015625, %v600_v1  ;;  %v613_v5 = vmul.f32 0.015625, %v603_v2 }
 0x23c   : > { %v646_v6 = vmul.f32 %v751_v62, %v631_v0 }
 0x23d   : > { %v911_v7 = vpop.eup %910  ;;  %v620_v8 = vadd.f32 1e-05, %v612_v4  ;;  %v621_v10 = vadd.f32 1e-05, %v613_v5 }
 0x23e   : > { %v913_v9 = vpop.eup %912  ;;  %v661_v11 = vadd.f32 %v752_v3, %v646_v6  ;;  %v632_v12 = vmul.f32 %v911_v7, %v1135_v16  ;;  %v606_v13 = vpop.xlane.xlu1 %605 }
 0x23f   : > { %v633_v14 = vmul.f32 %v913_v9, %v1133_v15  ;;  %918 = vrsqrt.f32 %v620_v8  ;;  %v614_v17 = vmul.f32 0.015625, %v606_v13 }
 0x240   : > { %669 = vst.msk [vmem:[%s1180_s13] sm:$0xff] %vm533_vm1, %v661_v11  ;;  %v647_v18 = vmul.f32 %v751_v62, %v632_v12  ;;  %920 = vrsqrt.f32 %v621_v10 }
 0x241   : > { %v915_v19 = vpop.eup %914  ;;  %v648_v20 = vmul.f32 %v751_v62, %v633_v14  ;;  %v622_v21 = vadd.f32 1e-05, %v614_v17 }
 0x242   : > { %v662_v23 = vadd.f32 %v752_v3, %v647_v18  ;;  %v634_v24 = vmul.f32 %v915_v19, %v1142_v22 }
 0x243   : > { %v663_v25 = vadd.f32 %v752_v3, %v648_v20  ;;  %922 = vrsqrt.f32 %v622_v21 }
 0x244   : > { %670 = vst.msk [vmem:[%s1180_s13 + $0x8] sm:$0xff] %vm533_vm1, %v662_v23  ;;  %v649_v15 = vmul.f32 %v751_v62, %v634_v24 }
 0x245   : > { %v917_v16 = vpop.eup %916  ;;  %671 = vst.msk [vmem:[%s1180_s13 + $0x10] sm:$0xff] %vm533_vm1, %v663_v25 }
 0x246   : > { %v664_v26 = vadd.f32 %v752_v3, %v649_v15  ;;  %v635_v27 = vmul.f32 %v917_v16, %v1148_v28 }
 0x248   : > { %672 = vst.msk [vmem:[%s1180_s13 + $0x18] sm:$0xff] %vm533_vm1, %v664_v26  ;;  %v650_v29 = vmul.f32 %v751_v62, %v635_v27 }
 0x249   : > { %v919_v30 = vpop.eup %918 }
 0x24a   : > { %v921_v22 = vpop.eup %920  ;;  %v665_v31 = vadd.f32 %v752_v3, %v650_v29  ;;  %v636_v32 = vmul.f32 %v919_v30, %v1153_v35 }
 0x24b   : > { %v637_v33 = vmul.f32 %v921_v22, %v1155_v36 }
 0x24c   : > { %673 = vst.msk [vmem:[%s1180_s13 + $0x20] sm:$0xff] %vm533_vm1, %v665_v31  ;;  %v651_v34 = vmul.f32 %v751_v62, %v636_v32 }
 0x24d   : > { %v923_v37 = vpop.eup %922  ;;  %v652_v38 = vmul.f32 %v751_v62, %v637_v33 }
 0x24e   : > { %v666_v39 = vadd.f32 %v752_v3, %v651_v34  ;;  %v638_v28 = vmul.f32 %v923_v37, %v1162_v42 }
 0x24f   : > { %v667_v40 = vadd.f32 %v752_v3, %v652_v38 }
 0x250   : > { %674 = vst.msk [vmem:[%s1180_s13 + $0x28] sm:$0xff] %vm533_vm1, %v666_v39  ;;  %v653_v41 = vmul.f32 %v751_v62, %v638_v28 }
 0x251   : > { %675 = vst.msk [vmem:[%s1180_s13 + $0x30] sm:$0xff] %vm533_vm1, %v667_v40 }
 0x252   : > { %v668_v43 = vadd.f32 %v752_v3, %v653_v41 }
 0x254   : > { %676 = vst.msk [vmem:[%s1180_s13 + $0x38] sm:$0xff] %vm533_vm1, %v668_v43 }
 0x255 PF: > { %s15_s18 = sadd.s32 1, %s930_s18  }
 0x256   : > { %p12_p4 = scmp.ge.s32.totalorder %s15_s18, 4  }
 0x258   :  { %14 = sbr.rel (!%p12_p4) target bundleno = 1 (0x1), region = 70 }

</bundles_post_ra>
